<compile_context>
chip_gen: v7x
topology: tpu7x:2x2x1
jax: 0.10.0
libtpu: 0.0.40
codegen_flags: <defaults>
</compile_context>

<pallas_src>
import functools

import jax
import jax.numpy as jnp
from jax import lax
from jax.experimental import pallas as pl
from jax.experimental.pallas import tpu as pltpu


def autopad(k, p=None):
    if p is None:
        p = k // 2 if isinstance(k, int) else [v // 2 for v in k]
    return p


def _round_up(x, m):
    return (x + m - 1) // m * m


def _pick_tile(dim, preferred, align=128):
    """Largest multiple of `align` that divides `dim` (dim is a multiple of
    align after padding) and is <= preferred."""
    t = min(preferred, dim)
    t = max((t // align) * align, align)
    while t > align and dim % t != 0:
        t -= align
    return t


def _fused_matmul_bias_act_kernel(a_ref, w_ref, bias_ref, o_ref, acc_ref, *,
                                  apply_act):
    """One (tm, tn) output tile: accumulate bf16 a_tile @ w_tile over the K
    grid axis into an f32 VMEM accumulator, then apply folded-BN bias + SiLU."""
    kk = pl.program_id(2)

    @pl.when(kk == 0)
    def _init():
        acc_ref[...] = jnp.zeros_like(acc_ref)

    acc_ref[...] += jnp.dot(a_ref[...], w_ref[...],
                            preferred_element_type=jnp.float32)

    @pl.when(kk == pl.num_programs(2) - 1)
    def _finalize():
        y = acc_ref[...] + bias_ref[...]
        if apply_act:
            # SiLU(x) = x * sigmoid(x): exp and the approx reciprocal both go
            # to the EUP slot, keeping the epilogue off the VALU critical path.
            y = y * pl.reciprocal(1.0 + jnp.exp(-y), approx=True)
        o_ref[...] = y.astype(o_ref.dtype)


def conv_bn_silu(x, w, gamma, beta, running_mean, running_var, *,
                 stride=1, padding=None, groups=1, act=True, eps=1e-5):
    """x: (B, C1, H, W) NCHW, w: (C2, C1, KH, KW) OIHW. Returns NCHW output."""
    assert groups == 1  # TODO(synk): grouped conv (g > 1) not implemented.
    B, C1, H, W = x.shape
    C2, C1w, KH, KW = w.shape
    assert C1w == C1
    if padding is None:
        ph, pw = KH // 2, KW // 2                 # per-axis autopad (non-square safe)
    elif isinstance(padding, int):
        ph = pw = padding
    else:
        ph, pw = padding
    Ho = (H + 2 * ph - KH) // stride + 1
    Wo = (W + 2 * pw - KW) // stride + 1

    # ---- layout plumbing (pure JAX): NHWC + im2col, materialized in bf16 so
    # the kernel-tap-inflated patch matrix costs half the HBM traffic. ----
    xn = jnp.transpose(x, (0, 2, 3, 1)).astype(jnp.bfloat16)   # channels on lanes
    if ph or pw:
        xn = jnp.pad(xn, ((0, 0), (ph, ph), (pw, pw), (0, 0)))
    cols = []
    for i in range(KH):
        for j in range(KW):
            cols.append(lax.slice(
                xn,
                (0, i, j, 0),
                (B, i + stride * (Ho - 1) + 1, j + stride * (Wo - 1) + 1, C1),
                (1, stride, stride, 1)))
    patches = jnp.concatenate(cols, axis=-1)      # (B, Ho, Wo, KH*KW*C1) bf16
    # TODO(synk): for memory-bound early layers, move the KH*KW taps into the
    # kernel as a grid axis to avoid materializing the im2col matrix at all.

    M = B * Ho * Wo
    K = KH * KW * C1
    N = C2

    # Fold BatchNorm (inference): scale goes into the weights, bias into the epilogue.
    inv_std = 1.0 / jnp.sqrt(running_var.astype(jnp.float32) + eps)
    scale = gamma.astype(jnp.float32) * inv_std                         # (N,)
    bias = beta.astype(jnp.float32) - running_mean.astype(jnp.float32) * scale

    wm = jnp.transpose(w, (2, 3, 1, 0)).reshape(K, N).astype(jnp.float32)
    wm = (wm * scale[None, :]).astype(jnp.bfloat16)

    # ---- pad M, K, N to multiples of 128: lane-dense loads/stores, full MXU lanes ----
    Mp, Kp, Np = _round_up(M, 128), _round_up(K, 128), _round_up(N, 128)
    a = patches.reshape(M, K).astype(jnp.bfloat16)
    a = jnp.pad(a, ((0, Mp - M), (0, Kp - K)))
    wm = jnp.pad(wm, ((0, Kp - K), (0, Np - N)))
    bias2d = jnp.pad(bias.reshape(1, N), ((0, 0), (0, Np - N)))

    # ---- tiling (bf16 operands, f32 accumulator) ----
    tm = _pick_tile(Mp, 512)
    tn = _pick_tile(Np, 512)
    tk = _pick_tile(Kp, 1024)
    # v7x megacore: keep the parallel grid extent >= 2 when there is room.
    if (Mp // tm) * (Np // tn) < 2 and tm > 128:
        tm = _pick_tile(Mp, tm // 2)
    grid = (Mp // tm, Np // tn, Kp // tk)

    out_itemsize = jnp.dtype(x.dtype).itemsize
    # Explicit VMEM budget: double-buffered bf16 input tiles + output tiles +
    # the f32 accumulator, with 2x headroom, capped well under v7x's 64 MiB.
    vmem_bytes = (2 * (tm * tk + tk * tn) * 2      # bf16 A / W tiles (double-buffered)
                  + 2 * tn * 4                     # BN bias tiles
                  + 2 * tm * tn * out_itemsize     # output tiles
                  + tm * tn * 4)                   # f32 accumulator
    vmem_limit = int(min(max(2 * vmem_bytes, 16 * 1024 * 1024),
                         48 * 1024 * 1024))

    cost = pl.CostEstimate(
        flops=2 * Mp * Kp * Np,
        transcendentals=Mp * Np if act else 0,
        bytes_accessed=Mp * Kp * 2 + Kp * Np * 2 + Np * 4 + Mp * Np * out_itemsize)

    kernel = functools.partial(_fused_matmul_bias_act_kernel, apply_act=bool(act))

    out2d = pl.pallas_call(
        kernel,
        out_shape=jax.ShapeDtypeStruct((Mp, Np), x.dtype),
        grid_spec=pltpu.PrefetchScalarGridSpec(
            num_scalar_prefetch=0,
            grid=grid,
            in_specs=[
                pl.BlockSpec((tm, tk), lambda i, j, kk: (i, kk)),   # activations (bf16)
                pl.BlockSpec((tk, tn), lambda i, j, kk: (kk, j)),   # BN-scaled weights (bf16)
                pl.BlockSpec((1, tn), lambda i, j, kk: (0, j)),     # folded BN bias (f32)
            ],
            out_specs=pl.BlockSpec((tm, tn), lambda i, j, kk: (i, j)),
            scratch_shapes=[pltpu.VMEM((tm, tn), jnp.float32)],
        ),
        compiler_params=pltpu.CompilerParams(
            dimension_semantics=("parallel", "parallel", "arbitrary"),
            vmem_limit_bytes=vmem_limit,
        ),
        cost_estimate=cost,
    )(a, wm, bias2d)

    y = out2d[:M, :N].reshape(B, Ho, Wo, N)
    # TODO(synk): when chaining Conv blocks, stay NHWC and skip this transpose.
    return jnp.transpose(y, (0, 3, 1, 2))                   # back to NCHW


def _conv_bn_silu_reference(x, w, gamma, beta, running_mean, running_var, *,
                            stride=1, padding=None, act=True, eps=1e-5):
    p = autopad(w.shape[2], padding)
    y = lax.conv_general_dilated(
        x, w, window_strides=(stride, stride), padding=[(p, p), (p, p)],
        dimension_numbers=("NCHW", "OIHW", "NCHW"))
    scale = gamma / jnp.sqrt(running_var + eps)
    b = beta - running_mean * scale
    y = y * scale[None, :, None, None] + b[None, :, None, None]
    if act:
        y = y * (1.0 / (1.0 + jnp.exp(-y)))
    return y.astype(x.dtype)


if __name__ == "__main__":
    key = jax.random.PRNGKey(0)
    kx, kw, kg, kb, km, kv = jax.random.split(key, 6)

    B, C1, H, W = 2, 4, 16, 16
    C2, k, s = 8, 3, 1

    x = jax.random.normal(kx, (B, C1, H, W), dtype=jnp.float32)
    w = jax.random.normal(kw, (C2, C1, k, k), dtype=jnp.float32) * 0.1
    gamma = 1.0 + 0.1 * jax.random.normal(kg, (C2,), dtype=jnp.float32)
    beta = 0.1 * jax.random.normal(kb, (C2,), dtype=jnp.float32)
    running_mean = 0.1 * jax.random.normal(km, (C2,), dtype=jnp.float32)
    running_var = jax.random.uniform(kv, (C2,), jnp.float32, minval=0.5, maxval=1.5)

    out = conv_bn_silu(x, w, gamma, beta, running_mean, running_var,
                       stride=s, padding=None, act=True)
    out = jax.block_until_ready(out)

    ref = _conv_bn_silu_reference(x, w, gamma, beta, running_mean, running_var,
                                  stride=s, padding=None, act=True)

    assert out.shape == ref.shape, (out.shape, ref.shape)
    assert out.dtype == ref.dtype, (out.dtype, ref.dtype)
    assert bool(jnp.allclose(out, ref, atol=2e-2, rtol=2e-2)), (
        "mismatch vs reference: max abs diff = "
        + str(float(jnp.max(jnp.abs(out - ref)))))

    print("KERNEL_OK")
</pallas_src>

<mosaic_0001>
module attributes {stable_mosaic.version = 11 : i64} {
  func.func @_fused_matmul_bias_act_kernel(%arg0: i32, %arg1: i32, %arg2: i32, %arg3: memref<256x128xbf16, #tpu.memory_space<vmem>>, %arg4: memref<128x128xbf16, #tpu.memory_space<vmem>>, %arg5: memref<1x128xf32, #tpu.memory_space<vmem>>, %arg6: memref<256x128xf32, #tpu.memory_space<vmem>>, %arg7: memref<256x128xf32, #tpu.memory_space<vmem>>) attributes {dimension_semantics = [#tpu.dimension_semantics<parallel>, #tpu.dimension_semantics<parallel>, #tpu.dimension_semantics<arbitrary>], iteration_bounds = array<i64: 2, 1, 1>, scalar_prefetch = 0 : i64, scratch_operands = 1 : i64, tpu.core_type = #tpu.core_type<tc>, window_params = [{transform_indices = @transform_0, window_bounds = array<i64: 256, 128>}, {transform_indices = @transform_1, window_bounds = array<i64: 128, 128>}, {transform_indices = @transform_2, window_bounds = array<i64: 1, 128>}, {transform_indices = @transform_3, window_bounds = array<i64: 256, 128>}]} {
    %c0_i32 = arith.constant 0 : i32
    %0 = arith.cmpi eq, %arg2, %c0_i32 : i32
    %1 = arith.extui %0 : i1 to i32
    %c0_i32_0 = arith.constant 0 : i32
    %2 = arith.cmpi ne, %1, %c0_i32_0 : i32
    scf.if %2 {
      %cst_10 = arith.constant 0.000000e+00 : f32
      %12 = vector.broadcast %cst_10 : f32 to vector<256x128xf32>
      %c0_11 = arith.constant 0 : index
      %c0_12 = arith.constant 0 : index
      %13 = vector.load %arg7[%c0_11, %c0_12] : memref<256x128xf32, #tpu.memory_space<vmem>>, vector<256x128xf32>
      tpu.vector_store %arg7[%c0_11, %c0_12], %12 {strides = array<i32>} : memref<256x128xf32, #tpu.memory_space<vmem>>, vector<256x128xf32>,
    } else {
    }
    %c0 = arith.constant 0 : index
    %c0_1 = arith.constant 0 : index
    %3 = vector.load %arg7[%c0, %c0_1] : memref<256x128xf32, #tpu.memory_space<vmem>>, vector<256x128xf32>
    %c0_2 = arith.constant 0 : index
    %c0_3 = arith.constant 0 : index
    %4 = vector.load %arg3[%c0_2, %c0_3] : memref<256x128xbf16, #tpu.memory_space<vmem>>, vector<256x128xbf16>
    %c0_4 = arith.constant 0 : index
    %c0_5 = arith.constant 0 : index
    %5 = vector.load %arg4[%c0_4, %c0_5] : memref<128x128xbf16, #tpu.memory_space<vmem>>, vector<128x128xbf16>
    %cst = arith.constant dense<0.000000e+00> : vector<256x128xf32>
    %6 = tpu.matmul %4, %5, %cst {dimension_numbers = #tpu.dot_dimension_numbers<[1], [0], [0], [1], [0, 0, 1, 1], [], []>} : vector<256x128xbf16>, vector<128x128xbf16>, vector<256x128xf32> -> vector<256x128xf32>
    %7 = arith.addf %3, %6 : vector<256x128xf32>
    %c0_6 = arith.constant 0 : index
    %c0_7 = arith.constant 0 : index
    %8 = vector.load %arg7[%c0_6, %c0_7] : memref<256x128xf32, #tpu.memory_space<vmem>>, vector<256x128xf32>
    tpu.vector_store %arg7[%c0_6, %c0_7], %7 {strides = array<i32>} : memref<256x128xf32, #tpu.memory_space<vmem>>, vector<256x128xf32>,
    %c0_i32_8 = arith.constant 0 : i32
    %9 = arith.cmpi eq, %arg2, %c0_i32_8 : i32
    %10 = arith.extui %9 : i1 to i32
    %c0_i32_9 = arith.constant 0 : i32
    %11 = arith.cmpi ne, %10, %c0_i32_9 : i32
    scf.if %11 {
      %c0_10 = arith.constant 0 : index
      %c0_11 = arith.constant 0 : index
      %12 = vector.load %arg7[%c0_10, %c0_11] : memref<256x128xf32, #tpu.memory_space<vmem>>, vector<256x128xf32>
      %c0_12 = arith.constant 0 : index
      %c0_13 = arith.constant 0 : index
      %13 = vector.load %arg5[%c0_12, %c0_13] : memref<1x128xf32, #tpu.memory_space<vmem>>, vector<1x128xf32>
      %14 = vector.broadcast %13 : vector<1x128xf32> to vector<256x128xf32>
      %15 = arith.addf %12, %14 : vector<256x128xf32>
      %cst_14 = arith.constant 0.000000e+00 : f32
      %16 = vector.broadcast %cst_14 : f32 to vector<256x128xf32>
      %17 = arith.subf %16, %15 : vector<256x128xf32>
      %18 = math.exp %17 : vector<256x128xf32>
      %cst_15 = arith.constant 1.000000e+00 : f32
      %19 = vector.broadcast %cst_15 : f32 to vector<256x128xf32>
      %20 = arith.addf %19, %18 : vector<256x128xf32>
      %21 = tpu.reciprocal %20 {approx = true} : vector<256x128xf32> -> vector<256x128xf32>
      %22 = arith.mulf %15, %21 : vector<256x128xf32>
      %c0_16 = arith.constant 0 : index
      %c0_17 = arith.constant 0 : index
      %23 = vector.load %arg6[%c0_16, %c0_17] : memref<256x128xf32, #tpu.memory_space<vmem>>, vector<256x128xf32>
      tpu.vector_store %arg6[%c0_16, %c0_17], %22 {strides = array<i32>} : memref<256x128xf32, #tpu.memory_space<vmem>>, vector<256x128xf32>,
    } else {
    }
    return
  }
  func.func @transform_0(%arg0: i32, %arg1: i32, %arg2: i32) -> (i32, i32) {
    %c0_i32 = arith.constant 0 : i32
    return %arg0, %arg2 : i32, i32
  }
  func.func @transform_1(%arg0: i32, %arg1: i32, %arg2: i32) -> (i32, i32) {
    %c0_i32 = arith.constant 0 : i32
    return %arg2, %arg1 : i32, i32
  }
  func.func @transform_2(%arg0: i32, %arg1: i32, %arg2: i32) -> (i32, i32) {
    %c0_i32 = arith.constant 0 : i32
    %c0_i32_0 = arith.constant 0 : i32
    return %c0_i32, %arg1 : i32, i32
  }
  func.func @transform_3(%arg0: i32, %arg1: i32, %arg2: i32) -> (i32, i32) {
    %c0_i32 = arith.constant 0 : i32
    return %arg0, %arg1 : i32, i32
  }
}

</mosaic_0001>

<bundles_post_ra>
// kernel: tpu_custom_call.1
= control target key start
LH: loop header
LB: loop body
LE: loop exit
PB: predicated region body
PF: predicated region fallthrough
CT: control target
= control target key end

     0   :  { %8 = vsyncpa [#allocation4], 0  ;;  %s2168_s0 = inlined_call_operand.hbm [shape: bf16[512,128], index: 0, kind: input, shape index: {}]   ;;  %s2169_s1 = inlined_call_operand.hbm [shape: bf16[128,128], index: 1, kind: input, shape index: {}]   ;;  %s2170_s2 = inlined_call_operand.vmem [shape: f32[1,128], index: 2, kind: input, shape index: {}]   ;;  %s2171_s3 = inlined_call_operand.hbm [shape: f32[512,128], index: 3, kind: output, shape index: {}]  }
   0x1   :  { %10 = vsyncpa [#allocation4 + $0x1], 0 }
   0x2   :  { %11 = vsyncpa [#allocation7], 0 }
   0x3   :  { %12 = vsyncpa [#allocation5], 0 }
   0x4   :  { %14 = vsyncpa [#allocation5 + $0x1], 0  ;;  %s1704_s12 = smov 0   ;;  %s1706_s13 = smov 0  }
   0x5   :  { %s1708_s14 = smov 0   ;;  %s1710_s15 = smov 0  }
   0x6   :  { %s1712_s16 = smov 0   ;;  %s1714_s17 = smov 0  }
   0x7 LB: > { %s1169_s18 = sadd.s32 4294967295, %s1675_s17   ;;  %s1170_s19 = sadd.s32 4294967294, %s1675_s17   ;;  %s1675_s17 = sphi %s1714_s17, %s20_s17   ;;  %s1671_s16 = sphi %s1712_s16, %s2195_s16   ;;  %s1667_s15 = sphi %s1710_s15, %s2194_s15   ;;  %s1663_s14 = sphi %s1708_s14, %s2193_s14   ;;  %s1659_s13 = sphi %s1706_s13, %s2192_s13   ;;  %s1655_s12 = sphi %s1704_s12, %s2191_s12  }
   0x8   : > { %p61_p0 = scmp.ne.s32.totalorder %s1659_s13, %s1655_s12  ;;  %p1738_p1 = scmp.eq.s32.totalorder %s1169_s18, 0 }
   0x9   : > { %p1742_p2 = scmp.eq.s32.totalorder %s1169_s18, 1  ;;  %p147_p3 = scmp.eq.s32.totalorder %s1170_s19, 1 }
   0xa   : > { %s2176_s20 = scalar_select %p1738_p1, 1, 0 }
   0xb   : > { %s2177_s21 = scalar_select %p1742_p2, 1, 0 }
   0xc   : > { %p1748_p4 = por %p1738_p1, %p61_p0  ;;  %p1171_p5 = scmp.ge.s32.totalorder %s1675_s17, 1 }
   0xd   : > { %p1753_p6 = por %p147_p3, %p61_p0  ;;  %p154_p7 = scmp.lt.s32.totalorder %s1675_s17, 3 }
   0xe   : > { %s2178_s22 = scalar_select %p1748_p4, 1, 0 }
   0xf   : > { %s2179_s23 = scalar_select %p1753_p6, 1, 0 }
  0x10   : > { %p1758_p8 = pnand %p1171_p5, %p154_p7  ;;  %s1677_s25 = smov [#allocation6]  }
  0x11   : > { %s170_s26 = sshll.u32 %s1677_s25, 4  ;;  %s39_s28 = sadd.s32 1, %s1671_s16  ;;  %s171_s26 = int_to_ptr.vmem [resolvable:$true] %s170_s26 }
  0x12   : > { %s2180_s24 = scalar_select %p1758_p8, 1, 0 }
  0x13   : > { %p1310_p9 = pneg %p1758_p8  ;;  %s1531_s4 = scalar_lea.hbm %s2169_s1, 1024 }
  0x14   : > { %p1532_p12 = scmp.ne.s32.totalorder %s2169_s1, %s1531_s4  ;;  %p1538_p5 = scmp.lt.u32.totalorder %s1531_s4, %s2169_s1 }
  0x15   : > { %p1767_p11 = pnand %p1310_p9, %p1738_p1 }
  0x17   : > { %p1533_p13 = pneg %p1767_p11 }
  0x19   : > { %p1534_p0 = pnand %p1533_p13, %p1532_p12 }
  0x1b   : > { %p1535_p3 = pneg %p1534_p0 }
  0x1d   : > { %p1540_p7 = pnand %p1538_p5, %p1535_p3 }
  0x1f   : > { %1543 = shalt.err (!%p1540_p7)
}
  0x20   : > { %s1544_s9 = scalar_lea.vmem %s171_s26, 1024  ;;  %p1552_p1 = scmp.lt.s32.totalorder %s171_s26, %s171_s26 }
  0x21   : > { %p1545_p9 = scmp.ne.s32.totalorder %s171_s26, %s1544_s9  ;;  %p1553_p4 = scmp.lt.s32.totalorder %s1544_s9, %s1544_s9 }
  0x23   : > { %p1547_p10 = pnand %p1545_p9, %p1533_p13  ;;  %p1554_p8 = por %p1553_p4, %p1552_p1 }
  0x25   : > { %p1548_p6 = pneg %p1547_p10 }
  0x27   : > { %p1555_p2 = pnand %p1554_p8, %p1548_p6 }
  0x29   : > { %1558 = shalt.err (!%p1555_p2)
}
  0x2a   : > { %s1678_s10 = smov 64   ;;  %s1679_s11 = smov 4  }
  0x2b   : > { %1313 = dma.hbm_to_vmem [thread:$0]  (!%p1767_p11), %s2169_s1, 1024, %s171_s26, [#allocation7], %s1678_s10, %s1678_s10, %s1679_s11  }
  0x2c   : > { %p41_p1 = scmp.ge.s32.totalorder %s39_s28, 2  ;;  %s48_s25 = sadd.s32 1, %s1663_s14 }
  0x2d   : > { %p55_p2 = scmp.ne.s32.totalorder %s1663_s14, %s1659_s13  ;;  %p56_p4 = scmp.eq.s32.totalorder %s1675_s17, 0 }
  0x2e   : > { %s2197_s28 = smov (%p41_p1, %s39_s28), 0  ;;  %p2183_p8 = scmp.ne.s32.totalorder %s2177_s21, 0 }
  0x2f   : > { %p1797_p6 = por %p56_p4, %p55_p2  ;;  %s43_s30 = ssub.s32 %s1671_s16, %s2197_s28 }
  0x30   : > { %p1803_p10 = por %p2183_p8, %p55_p2  ;;  %p1323_p12 = scmp.lt.s32.totalorder %s1675_s17, 2 }
  0x31   : > { %p46_p11 = scmp.eq.s32.totalorder %s43_s30, 0  ;;  %s190_s26 = sand.u32 1, %s1663_s14  }
  0x32   : > { %s1175_s4 = sshll.u32 %s190_s26, 7  ;;  %s1212_s6 = sshll.u32 %s1671_s16, 11 }
  0x33   : > { %s1812_s5 = scalar_select %p46_p11, %s1663_s14, %s48_s25  }
  0x34   : > { %s1818_s9 = scalar_lea.hbm %s2168_s0, %s1212_s6  ;;  %s194_s21 = scalar_lea.vmem [#allocation3], %s1175_s4 }
  0x35   : > { %s202_s18 = sshll.u32 %s194_s21, 4  ;;  %p1824_p13 = pnand %p1323_p12, %p1797_p6  ;;  %s1820_s18 = int_to_ptr.vmem [resolvable:$true] %s202_s18 }
  0x36   : > { %s1828_s25 = scalar_lea.sflag [#allocation4], %s190_s26  ;;  %s1559_s30 = scalar_lea.hbm %s1818_s9, 2048 }
  0x37   : > { %p1560_p0 = scmp.ne.s32.totalorder %s1818_s9, %s1559_s30  ;;  %p1561_p3 = pneg %p1824_p13 }
  0x38   : > { %s1564_s29 = scalar_lea.hbm %s2168_s0, 4096  ;;  %p1565_p9 = scmp.lt.u32.totalorder %s1818_s9, %s2168_s0 }
  0x39   : > { %p1562_p5 = pnand %p1561_p3, %p1560_p0  ;;  %p1566_p1 = scmp.lt.u32.totalorder %s1564_s29, %s1559_s30 }
  0x3a   : > { %p1568_p4 = scmp.lt.u32.totalorder %s1559_s30, %s1818_s9 }
  0x3b   : > { %p1563_p7 = pneg %p1562_p5  ;;  %p1567_p2 = por %p1566_p1, %p1565_p9 }
  0x3d   : > { %p1569_p6 = por %p1568_p4, %p1567_p2 }
  0x3f   : > { %p1570_p8 = pnand %p1569_p6, %p1563_p7 }
  0x41   : > { %1573 = shalt.err (!%p1570_p8)
}
  0x42   : > { %s1574_s26 = scalar_lea.vmem %s1820_s18, 2048  ;;  %s1680_s21 = smov [#allocation3]  }
  0x43   : > { %p1575_p12 = scmp.ne.s32.totalorder %s1820_s18, %s1574_s26  ;;  %s1579_s4 = sshll.u32 %s1680_s21, 4  ;;  %s1580_s4 = int_to_ptr.vmem [resolvable:$false] %s1579_s4 }
  0x44   : > { %s1581_s6 = scalar_lea.vmem %s1580_s4, 4096  ;;  %p1582_p5 = scmp.lt.s32.totalorder %s1820_s18, %s1580_s4 }
  0x45   : > { %p1577_p11 = pnand %p1575_p12, %p1561_p3  ;;  %p1583_p9 = scmp.lt.s32.totalorder %s1581_s6, %s1574_s26 }
  0x47   : > { %p1578_p0 = pneg %p1577_p11  ;;  %p1584_p1 = por %p1583_p9, %p1582_p5 }
  0x49   : > { %p1585_p2 = pnand %p1584_p1, %p1578_p0 }
  0x4b   : > { %1588 = shalt.err (!%p1585_p2)
}
  0x4c   : > { %1317 = dma.hbm_to_vmem [thread:$0]  (!%p1824_p13), %s1818_s9, 2048, %s1820_s18, %s1828_s25, %s1678_s10, %s1678_s10, %s1679_s11  }
  0x4d   : > { %p2186_p3 = scmp.ne.s32.totalorder %s2180_s24, 0 }
  0x4e   : > { %s1862_s30 = sand.u32 (!%p2186_p3), 1, %s1659_s13   ;;  %p2187_p7 = scmp.ne.s32.totalorder (!%p2186_p3), %s2178_s22, 0 }
  0x4f   : > { %214 = sbr.rel (%p2186_p3) target bundleno = 441 (0x1b9), region = 32  ;;  %s1179_s29 = sshll.u32 (!%p2186_p3), %s1862_s30, 7 }
  0x50   : > { %s217_s7 = scalar_lea.sflag (!%p2186_p3), [#allocation4], %s1862_s30  ;;  %s1866_s8 = scalar_lea.vmem (!%p2186_p3), [#allocation3], %s1179_s29 }
  0x56   : > { %1642 = dma.done.wait (%p2187_p7), %s217_s7, 2048  }
  0x57   : > { %1644 = vsyncadd (%p2187_p7), %s217_s7, 4294965248  ;;  %p2188_p13 = scmp.ne.s32.totalorder %s2176_s20, 0 }
  0x59   : > { %1646 = dma.done.wait (%p2188_p13), [#allocation7], 1024  }
  0x5a   : > { %1648 = vsyncadd (%p2188_p13), [#allocation7], 4294966272  ;;  %v1379_v0 = vld [vmem:[#allocation6] sm:$0xff]   ;;  %v1380_v1 = vld [vmem:[#allocation6 + $0x8] sm:$0xff]   ;;  %s1181_s24 = sshll.u32 %s1862_s30, 8  ;;  %s1213_s11 = sshll.u32 %s1667_s15, 12 }
  0x5b   : > { %1238 = vmatprep.subr.bf16.mxu0 %v1379_v0  ;;  %1286 = vmatprep.subr.bf16.mxu1 %v1379_v0  ;;  %v1381_v2 = vld [vmem:[#allocation6 + $0x10] sm:$0xff]   ;;  %v1382_v3 = vld [vmem:[#allocation6 + $0x18] sm:$0xff]   ;;  %v1387_v4 = vld [vmem:[%s1866_s8] sm:$0xff]   ;;  %s2010_s10 = scalar_lea.vmem [#allocation8], %s1181_s24  ;;  %s2113_s15 = scalar_lea.hbm %s2171_s3, %s1213_s11 }
  0x5c   : > { %1239 = vmatpush3.bf16.msra.mxu0 %v1379_v0  ;;  %1294 = vmatpush3.bf16.msra.mxu1 %v1379_v0  ;;  %v1388_v5 = vld [vmem:[%s1866_s8 + $0x40] sm:$0xff]   ;;  %v1384_v7 = vld [vmem:[#allocation6 + $0x28] sm:$0xff]   ;;  %v1385_v8 = vld [vmem:[#allocation6 + $0x30] sm:$0xff]   ;;  %s1055_s9 = sshll.u32 %s2010_s10, 4  ;;  %s1041_s25 = scalar_lea.sflag [#allocation5], %s1862_s30  ;;  %s2115_s9 = int_to_ptr.vmem [resolvable:$true] %s1055_s9 }
  0x5d   : > { %1240 = vmatprep.subr.bf16.mxu0 %v1380_v1  ;;  %1287 = vmatprep.subr.bf16.mxu1 %v1380_v1  ;;  %v1383_v6 = vld [vmem:[#allocation6 + $0x20] sm:$0xff]   ;;  %v1386_v9 = vld [vmem:[#allocation6 + $0x38] sm:$0xff]   ;;  %v1389_v10 = vld [vmem:[%s1866_s8 + $0x8] sm:$0xff]   ;;  %s1589_s26 = scalar_lea.vmem %s2115_s9, 4096  ;;  %s1681_s21 = smov [#allocation8]  }
  0x5e   : > { %1254 = vmatprep.mubr.bf16.mxu0 %v1387_v4  ;;  %1270 = vmatprep.mubr.bf16.mxu1 %v1388_v5  ;;  %v1390_v11 = vld [vmem:[%s1866_s8 + $0x48] sm:$0xff]   ;;  %v1391_v12 = vld [vmem:[%s1866_s8 + $0x10] sm:$0xff]   ;;  %v1393_v14 = vld [vmem:[%s1866_s8 + $0x18] sm:$0xff]   ;;  %p1590_p4 = scmp.ne.s32.totalorder %s2115_s9, %s1589_s26  ;;  %s1593_s4 = sshll.u32 %s1681_s21, 4  ;;  %s1594_s4 = int_to_ptr.vmem [resolvable:$false] %s1593_s4 }
  0x5f   : > { %v1392_v13 = vld [vmem:[%s1866_s8 + $0x50] sm:$0xff]   ;;  %v1394_v15 = vld [vmem:[%s1866_s8 + $0x58] sm:$0xff]   ;;  %v1395_v16 = vld [vmem:[%s1866_s8 + $0x20] sm:$0xff]   ;;  %s1595_s6 = scalar_lea.vmem %s1594_s4, 8192  ;;  %p1596_p12 = scmp.lt.s32.totalorder %s2115_s9, %s1594_s4 }
  0x60   : > { %1241 = vmatpush3.bf16.msra.mxu0 %v1380_v1  ;;  %1295 = vmatpush3.bf16.msra.mxu1 %v1380_v1  ;;  %v1396_v17 = vld [vmem:[%s1866_s8 + $0x60] sm:$0xff]   ;;  %v1397_v18 = vld [vmem:[%s1866_s8 + $0x28] sm:$0xff]   ;;  %v1399_v20 = vld [vmem:[%s1866_s8 + $0x30] sm:$0xff]   ;;  %p1591_p6 = pnand %p1590_p4, %p1803_p10  ;;  %p1597_p11 = scmp.lt.s32.totalorder %s1595_s6, %s1589_s26 }
  0x61   : > { %1242 = vmatprep.subr.bf16.mxu0 %v1381_v2  ;;  %1288 = vmatprep.subr.bf16.mxu1 %v1381_v2  ;;  %v1398_v19 = vld [vmem:[%s1866_s8 + $0x68] sm:$0xff]   ;;  %v1400_v21 = vld [vmem:[%s1866_s8 + $0x70] sm:$0xff]   ;;  %v1401_v22 = vld [vmem:[%s1866_s8 + $0x38] sm:$0xff]  }
  0x62   : > { %v1402_v23 = vld [vmem:[%s1866_s8 + $0x78] sm:$0xff]   ;;  %v1895_v24 = vld [vmem:[%s2170_s2] ss:$0 sm:$0xff]  ;;  %p1592_p8 = pneg %p1591_p6  ;;  %p1598_p0 = por %p1597_p11, %p1596_p12 }
  0x64   : > { %1243 = vmatpush3.bf16.msra.mxu0 %v1381_v2  ;;  %1296 = vmatpush3.bf16.msra.mxu1 %v1381_v2  ;;  %p1599_p5 = pnand %p1598_p0, %p1592_p8 }
  0x65   : > { %1244 = vmatprep.subr.bf16.mxu0 %v1382_v3  ;;  %1289 = vmatprep.subr.bf16.mxu1 %v1382_v3 }
  0x68   : > { %1245 = vmatpush3.bf16.msra.mxu0 %v1382_v3  ;;  %1297 = vmatpush3.bf16.msra.mxu1 %v1382_v3 }
  0x69   : > { %1246 = vmatprep.subr.bf16.mxu0 %v1383_v6  ;;  %1290 = vmatprep.subr.bf16.mxu1 %v1383_v6 }
  0x6c   : > { %1247 = vmatpush3.bf16.msra.mxu0 %v1383_v6  ;;  %1298 = vmatpush3.bf16.msra.mxu1 %v1383_v6 }
  0x6d   : > { %1248 = vmatprep.subr.bf16.mxu0 %v1384_v7  ;;  %1291 = vmatprep.subr.bf16.mxu1 %v1384_v7 }
  0x70   : > { %1249 = vmatpush3.bf16.msra.mxu0 %v1384_v7  ;;  %1299 = vmatpush3.bf16.msra.mxu1 %v1384_v7 }
  0x71   : > { %1250 = vmatprep.subr.bf16.mxu0 %v1385_v8  ;;  %1292 = vmatprep.subr.bf16.mxu1 %v1385_v8 }
  0x74   : > { %1251 = vmatpush3.bf16.msra.mxu0 %v1385_v8  ;;  %1300 = vmatpush3.bf16.msra.mxu1 %v1385_v8 }
  0x75   : > { %1252 = vmatprep.subr.bf16.mxu0 %v1386_v9  ;;  %1293 = vmatprep.subr.bf16.mxu1 %v1386_v9 }
  0x78   : > { %1253 = vmatpush3.bf16.msra.mxu0 %v1386_v9  ;;  %1301 = vmatpush3.bf16.msra.mxu1 %v1386_v9 }
  0x7b   : > { %1255 = vmatmul.mubr.bf16.vlgmr.msra.gmra.mrb[0].mxu0 %v1389_v10  ;;  %1271 = vmatmul.mubr.bf16.vlgmr.msra.gmra.mrb[0].mxu1 %v1390_v11 }
  0x7c   : > { %1258 = vmatprep.mubr.bf16.mxu0 %v1391_v12  ;;  %1274 = vmatprep.mubr.bf16.mxu1 %v1392_v13 }
  0x83   : > { %1259 = vmatmul.mubr.bf16.gmra.mrb[4].mxu0 %v1393_v14  ;;  %1275 = vmatmul.mubr.bf16.gmra.mrb[4].mxu1 %v1394_v15 }
  0x84   : > { %1262 = vmatprep.mubr.bf16.mxu0 %v1395_v16  ;;  %1278 = vmatprep.mubr.bf16.mxu1 %v1396_v17 }
  0x8b   : > { %1263 = vmatmul.mubr.bf16.gmra.mrb[8].mxu0 %v1397_v18  ;;  %1279 = vmatmul.mubr.bf16.gmra.mrb[8].mxu1 %v1398_v19 }
  0x8c   : > { %1266 = vmatprep.mubr.bf16.mxu0 %v1399_v20  ;;  %1282 = vmatprep.mubr.bf16.mxu1 %v1400_v21 }
  0x93   : > { %1267 = vmatmul.mubr.bf16.gmra.mrb[12].mxu0 %v1401_v22  ;;  %1283 = vmatmul.mubr.bf16.gmra.mrb[12].mxu1 %v1402_v23 }
 0x14e   : > { %v1256_v25 = vpop.f32.mrb[0].mxu0  ;;  %v1272_v26 = vpop.f32.mrb[0].mxu1 }
 0x14f   : > { %v1898_v27 = vadd.f32 %v1256_v25, %v1895_v24  ;;  %v1901_v28 = vadd.f32 %v1272_v26, %v1895_v24  ;;  %v551_v29 = vpop.f32.mrb[1].mxu0  ;;  %v615_v30 = vpop.f32.mrb[1].mxu1 }
 0x150   : > { %v1904_v31 = vadd.f32 %v1895_v24, %v551_v29  ;;  %v1907_v32 = vadd.f32 %v1895_v24, %v615_v30  ;;  %v1257_v33 = vpop.f32.mrb[2].mxu0  ;;  %v1273_v34 = vpop.f32.mrb[2].mxu1 }
 0x151   : > { %v818_v35 = vsub.f32 0.0, %v1898_v27  ;;  %v834_v36 = vsub.f32 0.0, %v1901_v28  ;;  %v1912_v37 = vadd.f32 %v1257_v33, %v1895_v24  ;;  %v1915_v38 = vadd.f32 %v1273_v34, %v1895_v24  ;;  %v554_v39 = vpop.f32.mrb[3].mxu0  ;;  %v618_v40 = vpop.f32.mrb[3].mxu1 }
 0x152   : > { %v816_v41 = vsub.f32 0.0, %v1904_v31  ;;  %v832_v42 = vsub.f32 0.0, %v1907_v32  ;;  %v1920_v43 = vadd.f32 %v1895_v24, %v554_v39  ;;  %v1923_v44 = vadd.f32 %v1895_v24, %v618_v40 }
 0x153   : > { %v852_v45 = vmul.f32 1.442695, %v818_v35  ;;  %v884_v46 = vmul.f32 1.442695, %v834_v36  ;;  %v819_v47 = vsub.f32 0.0, %v1912_v37  ;;  %v835_v48 = vsub.f32 0.0, %v1915_v38 }
 0x154   : > { %v848_v49 = vmul.f32 1.442695, %v816_v41  ;;  %v880_v50 = vmul.f32 1.442695, %v832_v42  ;;  %v817_v51 = vsub.f32 0.0, %v1920_v43  ;;  %v833_v52 = vsub.f32 0.0, %v1923_v44 }
 0x155   : > { %1403 = vpow2.f32 %v852_v45  ;;  %v854_v53 = vmul.f32 1.442695, %v819_v47  ;;  %v886_v54 = vmul.f32 1.442695, %v835_v48 }
 0x156   : > { %1405 = vpow2.f32 %v884_v46  ;;  %v1260_v55 = vpop.f32.mrb[4].mxu0  ;;  %v1276_v56 = vpop.f32.mrb[4].mxu1  ;;  %v850_v57 = vmul.f32 1.442695, %v817_v51  ;;  %v882_v62 = vmul.f32 1.442695, %v833_v52 }
 0x157   : > { %1407 = vpow2.f32 %v848_v49  ;;  %v1930_v58 = vadd.f32 %v1260_v55, %v1895_v24  ;;  %v1933_v59 = vadd.f32 %v1276_v56, %v1895_v24  ;;  %v567_v60 = vpop.f32.mrb[5].mxu0  ;;  %v631_v61 = vpop.f32.mrb[5].mxu1 }
 0x158   : > { %1409 = vpow2.f32 %v880_v50  ;;  %v1936_v63 = vadd.f32 %v1895_v24, %v567_v60  ;;  %v1939_v0 = vadd.f32 %v1895_v24, %v631_v61  ;;  %v1261_v1 = vpop.f32.mrb[6].mxu0  ;;  %v1277_v2 = vpop.f32.mrb[6].mxu1 }
 0x159   : > { %1411 = vpow2.f32 %v854_v53  ;;  %v822_v3 = vsub.f32 0.0, %v1930_v58  ;;  %v838_v4 = vsub.f32 0.0, %v1933_v59  ;;  %v1944_v5 = vadd.f32 %v1261_v1, %v1895_v24  ;;  %v570_v6 = vpop.f32.mrb[7].mxu0  ;;  %v634_v7 = vpop.f32.mrb[7].mxu1 }
 0x15a   : > { %1413 = vpow2.f32 %v886_v54  ;;  %v820_v8 = vsub.f32 0.0, %v1936_v63  ;;  %v836_v9 = vsub.f32 0.0, %v1939_v0  ;;  %v1950_v19 = vadd.f32 %v1277_v2, %v1895_v24 }
 0x15b   : > { %1415 = vpow2.f32 %v850_v57  ;;  %v860_v10 = vmul.f32 1.442695, %v822_v3  ;;  %v892_v11 = vmul.f32 1.442695, %v838_v4  ;;  %v823_v12 = vsub.f32 0.0, %v1944_v5 }
 0x15c   : > { %1417 = vpow2.f32 %v882_v62  ;;  %v856_v13 = vmul.f32 1.442695, %v820_v8  ;;  %v888_v14 = vmul.f32 1.442695, %v836_v9  ;;  %v1953_v25 = vadd.f32 %v1895_v24, %v570_v6 }
 0x15d   : > { %1419 = vpow2.f32 %v860_v10  ;;  %v862_v15 = vmul.f32 1.442695, %v823_v12  ;;  %v1956_v34 = vadd.f32 %v1895_v24, %v634_v7  ;;  %v839_v45 = vsub.f32 0.0, %v1950_v19 }
 0x15e   : > { %1421 = vpow2.f32 %v892_v11  ;;  %v1264_v16 = vpop.f32.mrb[8].mxu0  ;;  %v1280_v17 = vpop.f32.mrb[8].mxu1  ;;  %v821_v49 = vsub.f32 0.0, %v1953_v25 }
 0x15f   : > { %v1404_v18 = vpop.eup %1403  ;;  %1423 = vpow2.f32 %v856_v13  ;;  %v583_v20 = vpop.f32.mrb[9].mxu0  ;;  %v1960_v46 = vadd.f32 %v1264_v16, %v1895_v24  ;;  %v1964_v50 = vadd.f32 %v1280_v17, %v1895_v24  ;;  %v837_v53 = vsub.f32 0.0, %v1956_v34 }
 0x160   : > { %v647_v21 = vpop.f32.mrb[9].mxu1  ;;  %v1406_v22 = vpop.eup %1405  ;;  %v914_v23 = vadd.f32 1.0, %v1404_v18  ;;  %1425 = vpow2.f32 %v888_v14  ;;  %v1968_v56 = vadd.f32 %v1895_v24, %v583_v20  ;;  %v894_v1 = vmul.f32 1.442695, %v839_v45 }
 0x161   : > { %v1265_v26 = vpop.f32.mrb[10].mxu0  ;;  %v1281_v29 = vpop.f32.mrb[10].mxu1  ;;  %v930_v33 = vadd.f32 1.0, %v1406_v22  ;;  %1427 = vpow2.f32 %v862_v15  ;;  %v826_v2 = vsub.f32 0.0, %v1960_v46  ;;  %v858_v8 = vmul.f32 1.442695, %v821_v49 }
 0x162   : > { %v1408_v30 = vpop.eup %1407  ;;  %v586_v35 = vpop.f32.mrb[11].mxu0  ;;  %1429 = vrcp.f32 %v914_v23  ;;  %v842_v9 = vsub.f32 0.0, %v1964_v50  ;;  %v890_v14 = vmul.f32 1.442695, %v837_v53  ;;  %v1982_v15 = vadd.f32 %v1895_v24, %v647_v21 }
 0x163   : > { %v1410_v36 = vpop.eup %1409  ;;  %v912_v39 = vadd.f32 1.0, %v1408_v30  ;;  %v650_v40 = vpop.f32.mrb[11].mxu1  ;;  %1431 = vrcp.f32 %v930_v33  ;;  %v824_v22 = vsub.f32 0.0, %v1968_v56  ;;  %v1990_v23 = vadd.f32 %v1265_v26, %v1895_v24 }
 0x164   : > { %v1412_v41 = vpop.eup %1411  ;;  %v928_v42 = vadd.f32 1.0, %v1410_v36  ;;  %v868_v36 = vmul.f32 1.442695, %v826_v2  ;;  %v1996_v45 = vadd.f32 %v1895_v24, %v586_v35  ;;  %v840_v26 = vsub.f32 0.0, %v1982_v15 }
 0x165   : > { %v1414_v47 = vpop.eup %1413  ;;  %1433 = vrcp.f32 %v912_v39  ;;  %v915_v48 = vadd.f32 1.0, %v1412_v41  ;;  %v1993_v39 = vadd.f32 %v1281_v29, %v1895_v24  ;;  %v2001_v49 = vadd.f32 %v1895_v24, %v650_v40 }
 0x166   : > { %v1416_v51 = vpop.eup %1415  ;;  %1435 = vrcp.f32 %v928_v42  ;;  %v931_v52 = vadd.f32 1.0, %v1414_v47  ;;  %v1268_v57 = vpop.f32.mrb[12].mxu0  ;;  %v900_v42 = vmul.f32 1.442695, %v842_v9 }
 0x167   : > { %v1418_v54 = vpop.eup %1417  ;;  %1437 = vrcp.f32 %v915_v48  ;;  %v913_v55 = vadd.f32 1.0, %v1416_v51  ;;  %v1284_v60 = vpop.f32.mrb[12].mxu1  ;;  %v2006_v53 = vadd.f32 %v1268_v57, %v1895_v24  ;;  %v864_v57 = vmul.f32 1.442695, %v824_v22 }
 0x168   : > { %v1420_v61 = vpop.eup %1419  ;;  %1439 = vrcp.f32 %v931_v52  ;;  %v929_v62 = vadd.f32 1.0, %v1418_v54  ;;  %v1971_v3 = vpop.f32.mrb[13].mxu0  ;;  %v827_v52 = vsub.f32 0.0, %v1990_v23  ;;  %v2016_v40 = vadd.f32 %v1284_v60, %v1895_v24 }
 0x169   : > { %v1973_v4 = vpop.f32.mrb[13].mxu1  ;;  %v1422_v6 = vpop.eup %1421  ;;  %1441 = vrcp.f32 %v913_v55  ;;  %v918_v7 = vadd.f32 1.0, %v1420_v61  ;;  %v825_v61 = vsub.f32 0.0, %v1996_v45  ;;  %v841_v2 = vsub.f32 0.0, %v2001_v49 }
 0x16a   : > { %v1976_v10 = vpop.f32.mrb[14].mxu0  ;;  %v1978_v11 = vpop.f32.mrb[14].mxu1  ;;  %1443 = vrcp.f32 %v929_v62  ;;  %v934_v13 = vadd.f32 1.0, %v1422_v6 }
 0x16b   : > { %v1424_v12 = vpop.eup %1423  ;;  %v1984_v16 = vpop.f32.mrb[15].mxu0  ;;  %1445 = vrcp.f32 %v918_v7  ;;  %v830_v7 = vsub.f32 0.0, %v2006_v53  ;;  %v898_v22 = vmul.f32 1.442695, %v841_v2 }
 0x16c   : > { %v1986_v17 = vpop.f32.mrb[15].mxu1  ;;  %v1426_v18 = vpop.eup %1425  ;;  %v916_v20 = vadd.f32 1.0, %v1424_v12  ;;  %1447 = vrcp.f32 %v934_v13  ;;  %v846_v12 = vsub.f32 0.0, %v2016_v40  ;;  %v2063_v2 = vadd.f32 %v1895_v24, %v1984_v16 }
 0x16d   : > { %v1428_v30 = vpop.eup %1427  ;;  %v932_v33 = vadd.f32 1.0, %v1426_v18 }
 0x16e   : > { %v1430_v21 = vpop.eup %1429  ;;  %1449 = vrcp.f32 %v916_v20  ;;  %v919_v41 = vadd.f32 1.0, %v1428_v30 }
 0x16f   : > { %v1432_v47 = vpop.eup %1431  ;;  %v978_v48 = vmul.f32 %v1430_v21, %v1898_v27  ;;  %1451 = vrcp.f32 %v932_v33  ;;  %v876_v33 = vmul.f32 1.442695, %v830_v7  ;;  %v908_v21 = vmul.f32 1.442695, %v846_v12 }
 0x170   : > { %v1434_v51 = vpop.eup %1433  ;;  %v994_v29 = vmul.f32 %v1432_v47, %v1901_v28  ;;  %1453 = vrcp.f32 %v919_v41  ;;  %v843_v28 = vsub.f32 0.0, %v1993_v39 }
 0x171   : > { %v1436_v35 = vpop.eup %1435  ;;  %1010 = vst [vmem:[%s2010_s10 + $0x10] sm:$0xff] %v978_v48  ;;  %v976_v27 = vmul.f32 %v1434_v51, %v1904_v31  ;;  %1455 = vpow2.f32 %v894_v1  ;;  %v896_v1 = vmul.f32 1.442695, %v840_v26 }
 0x172   : > { %v1438_v54 = vpop.eup %1437  ;;  %1026 = vst [vmem:[%s2010_s10 + $0x90] sm:$0xff] %v994_v29  ;;  %v992_v55 = vmul.f32 %v1436_v35, %v1907_v32  ;;  %1457 = vpow2.f32 %v858_v8  ;;  %v870_v32 = vmul.f32 1.442695, %v827_v52  ;;  %v2046_v35 = vadd.f32 %v1895_v24, %v1971_v3 }
 0x173   : > { %v1440_v62 = vpop.eup %1439  ;;  %1008 = vst [vmem:[%s2010_s10] sm:$0xff] %v976_v27  ;;  %v979_v31 = vmul.f32 %v1438_v54, %v1912_v37  ;;  %1459 = vpow2.f32 %v890_v14  ;;  %v902_v37 = vmul.f32 1.442695, %v843_v28  ;;  %v2050_v28 = vadd.f32 %v1895_v24, %v1973_v4 }
 0x174   : > { %v1442_v60 = vpop.eup %1441  ;;  %1024 = vst [vmem:[%s2010_s10 + $0x80] sm:$0xff] %v992_v55  ;;  %v995_v6 = vmul.f32 %v1440_v62, %v1915_v38  ;;  %1461 = vpow2.f32 %v868_v36  ;;  %v866_v38 = vmul.f32 1.442695, %v825_v61  ;;  %v2058_v3 = vadd.f32 %v1978_v11, %v1895_v24 }
 0x175   : > { %v1444_v8 = vpop.eup %1443  ;;  %1011 = vst [vmem:[%s2010_s10 + $0x18] sm:$0xff] %v979_v31  ;;  %v977_v9 = vmul.f32 %v1442_v60, %v1920_v43  ;;  %1463 = vpow2.f32 %v900_v42  ;;  %v828_v4 = vsub.f32 0.0, %v2046_v35 }
 0x176   : > { %v1446_v13 = vpop.eup %1445  ;;  %1027 = vst [vmem:[%s2010_s10 + $0x98] sm:$0xff] %v995_v6  ;;  %v993_v14 = vmul.f32 %v1444_v8, %v1923_v44  ;;  %1465 = vpow2.f32 %v864_v57  ;;  %v2054_v57 = vadd.f32 %v1976_v10, %v1895_v24  ;;  %v844_v6 = vsub.f32 0.0, %v2050_v28 }
 0x177   : > { %v1448_v18 = vpop.eup %1447  ;;  %1009 = vst [vmem:[%s2010_s10 + $0x8] sm:$0xff] %v977_v9  ;;  %v982_v20 = vmul.f32 %v1446_v13, %v1930_v58  ;;  %1467 = vpow2.f32 %v896_v1  ;;  %v847_v16 = vsub.f32 0.0, %v2058_v3 }
 0x178   : > { %v1450_v43 = vpop.eup %1449  ;;  %1025 = vst [vmem:[%s2010_s10 + $0x88] sm:$0xff] %v993_v14  ;;  %v998_v30 = vmul.f32 %v1448_v18, %v1933_v59  ;;  %1469 = vpow2.f32 %v870_v32  ;;  %v2068_v32 = vadd.f32 %v1895_v24, %v1986_v17  ;;  %v831_v8 = vsub.f32 0.0, %v2054_v57 }
 0x179   : > { %v1452_v36 = vpop.eup %1451  ;;  %1014 = vst [vmem:[%s2010_s10 + $0x30] sm:$0xff] %v982_v20  ;;  %v980_v44 = vmul.f32 %v1450_v43, %v1936_v63  ;;  %1471 = vpow2.f32 %v902_v37  ;;  %v872_v14 = vmul.f32 1.442695, %v828_v4  ;;  %v904_v17 = vmul.f32 1.442695, %v844_v6 }
 0x17a   : > { %v1454_v41 = vpop.eup %1453  ;;  %1030 = vst [vmem:[%s2010_s10 + $0xb0] sm:$0xff] %v998_v30  ;;  %v996_v58 = vmul.f32 %v1452_v36, %v1939_v0  ;;  %1473 = vpow2.f32 %v866_v38  ;;  %v829_v38 = vsub.f32 0.0, %v2063_v2  ;;  %v845_v20 = vsub.f32 0.0, %v2068_v32 }
 0x17b   : > { %v1456_v42 = vpop.eup %1455  ;;  %1012 = vst [vmem:[%s2010_s10 + $0x20] sm:$0xff] %v980_v44  ;;  %v983_v47 = vmul.f32 %v1454_v41, %v1944_v5  ;;  %1475 = vpow2.f32 %v898_v22  ;;  %v878_v30 = vmul.f32 1.442695, %v831_v8  ;;  %v910_v44 = vmul.f32 1.442695, %v847_v16 }
 0x17c   : > { %v1458_v59 = vpop.eup %1457  ;;  %1028 = vst [vmem:[%s2010_s10 + $0xa0] sm:$0xff] %v996_v58  ;;  %v935_v48 = vadd.f32 1.0, %v1456_v42  ;;  %1477 = vpow2.f32 %v876_v33  ;;  %v874_v58 = vmul.f32 1.442695, %v829_v38 }
 0x17d   : > { %v1460_v26 = vpop.eup %1459  ;;  %1015 = vst [vmem:[%s2010_s10 + $0x38] sm:$0xff] %v983_v47  ;;  %v917_v63 = vadd.f32 1.0, %v1458_v59  ;;  %1479 = vpow2.f32 %v908_v21  ;;  %v906_v47 = vmul.f32 1.442695, %v845_v20 }
 0x17e   : > { %v1462_v51 = vpop.eup %1461  ;;  %1481 = vrcp.f32 %v935_v48  ;;  %v933_v29 = vadd.f32 1.0, %v1460_v26 }
 0x17f   : > { %v1464_v52 = vpop.eup %1463  ;;  %1483 = vrcp.f32 %v917_v63  ;;  %v922_v0 = vadd.f32 1.0, %v1462_v51 }
 0x180   : > { %v1466_v5 = vpop.eup %1465  ;;  %1485 = vrcp.f32 %v933_v29  ;;  %v938_v27 = vadd.f32 1.0, %v1464_v52 }
 0x181   : > { %v1468_v54 = vpop.eup %1467  ;;  %1487 = vrcp.f32 %v922_v0  ;;  %v920_v55 = vadd.f32 1.0, %v1466_v5 }
 0x182   : > { %v1470_v61 = vpop.eup %1469  ;;  %1489 = vrcp.f32 %v938_v27  ;;  %v936_v62 = vadd.f32 1.0, %v1468_v54 }
 0x183   : > { %v1472_v31 = vpop.eup %1471  ;;  %1491 = vrcp.f32 %v920_v55  ;;  %v923_v1 = vadd.f32 1.0, %v1470_v61 }
 0x184   : > { %v1474_v60 = vpop.eup %1473  ;;  %1493 = vrcp.f32 %v936_v62  ;;  %v939_v10 = vadd.f32 1.0, %v1472_v31 }
 0x185   : > { %v1476_v11 = vpop.eup %1475  ;;  %1495 = vrcp.f32 %v923_v1  ;;  %v921_v7 = vadd.f32 1.0, %v1474_v60 }
 0x186   : > { %v1478_v9 = vpop.eup %1477  ;;  %1497 = vrcp.f32 %v939_v10  ;;  %v937_v37 = vadd.f32 1.0, %v1476_v11 }
 0x187   : > { %v1480_v12 = vpop.eup %1479  ;;  %1499 = vrcp.f32 %v921_v7  ;;  %v926_v13 = vadd.f32 1.0, %v1478_v9 }
 0x188   : > { %v1482_v18 = vpop.eup %1481  ;;  %1501 = vrcp.f32 %v937_v37  ;;  %v942_v24 = vadd.f32 1.0, %v1480_v12 }
 0x189   : > { %v1484_v22 = vpop.eup %1483  ;;  %v999_v43 = vmul.f32 %v1482_v18, %v1950_v19  ;;  %1503 = vrcp.f32 %v926_v13 }
 0x18a   : > { %v1486_v33 = vpop.eup %1485  ;;  %v981_v36 = vmul.f32 %v1484_v22, %v1953_v25  ;;  %1505 = vrcp.f32 %v942_v24 }
 0x18b   : > { %v1488_v21 = vpop.eup %1487  ;;  %1031 = vst [vmem:[%s2010_s10 + $0xb8] sm:$0xff] %v999_v43  ;;  %v997_v41 = vmul.f32 %v1486_v33, %v1956_v34  ;;  %1507 = vpow2.f32 %v872_v14 }
 0x18c   : > { %v1490_v42 = vpop.eup %1489  ;;  %1013 = vst [vmem:[%s2010_s10 + $0x28] sm:$0xff] %v981_v36  ;;  %v986_v19 = vmul.f32 %v1488_v21, %v1960_v46  ;;  %1509 = vpow2.f32 %v904_v17 }
 0x18d   : > { %v1492_v59 = vpop.eup %1491  ;;  %1029 = vst [vmem:[%s2010_s10 + $0xa8] sm:$0xff] %v997_v41  ;;  %v1002_v25 = vmul.f32 %v1490_v42, %v1964_v50  ;;  %1511 = vpow2.f32 %v878_v30 }
 0x18e   : > { %v1494_v48 = vpop.eup %1493  ;;  %1018 = vst [vmem:[%s2010_s10 + $0x50] sm:$0xff] %v986_v19  ;;  %v984_v34 = vmul.f32 %v1492_v59, %v1968_v56  ;;  %1513 = vpow2.f32 %v910_v44 }
 0x18f   : > { %v1496_v26 = vpop.eup %1495  ;;  %1034 = vst [vmem:[%s2010_s10 + $0xd0] sm:$0xff] %v1002_v25  ;;  %v1000_v46 = vmul.f32 %v1494_v48, %v1982_v15  ;;  %1515 = vpow2.f32 %v874_v58 }
 0x190   : > { %v1498_v63 = vpop.eup %1497  ;;  %1016 = vst [vmem:[%s2010_s10 + $0x40] sm:$0xff] %v984_v34  ;;  %v987_v51 = vmul.f32 %v1496_v26, %v1990_v23  ;;  %1517 = vpow2.f32 %v906_v47 }
 0x191   : > { %v1500_v50 = vpop.eup %1499  ;;  %1032 = vst [vmem:[%s2010_s10 + $0xc0] sm:$0xff] %v1000_v46  ;;  %v1003_v29 = vmul.f32 %v1498_v63, %v1993_v39 }
 0x192   : > { %v1502_v56 = vpop.eup %1501  ;;  %1019 = vst [vmem:[%s2010_s10 + $0x58] sm:$0xff] %v987_v51  ;;  %v985_v52 = vmul.f32 %v1500_v50, %v1996_v45 }
 0x193   : > { %v1504_v0 = vpop.eup %1503  ;;  %1035 = vst [vmem:[%s2010_s10 + $0xd8] sm:$0xff] %v1003_v29  ;;  %v1001_v15 = vmul.f32 %v1502_v56, %v2001_v49 }
 0x194   : > { %v1506_v5 = vpop.eup %1505  ;;  %1017 = vst [vmem:[%s2010_s10 + $0x48] sm:$0xff] %v985_v52  ;;  %v990_v27 = vmul.f32 %v1504_v0, %v2006_v53 }
 0x195   : > { %v1508_v23 = vpop.eup %1507  ;;  %1033 = vst [vmem:[%s2010_s10 + $0xc8] sm:$0xff] %v1001_v15  ;;  %v1006_v54 = vmul.f32 %v1506_v5, %v2016_v40 }
 0x196   : > { %v1510_v55 = vpop.eup %1509  ;;  %1022 = vst [vmem:[%s2010_s10 + $0x70] sm:$0xff] %v990_v27  ;;  %v924_v39 = vadd.f32 1.0, %v1508_v23 }
 0x197   : > { %v1512_v61 = vpop.eup %1511  ;;  %1038 = vst [vmem:[%s2010_s10 + $0xf0] sm:$0xff] %v1006_v54  ;;  %v940_v62 = vadd.f32 1.0, %v1510_v55 }
 0x198   : > { %v1514_v31 = vpop.eup %1513  ;;  %1519 = vrcp.f32 %v924_v39  ;;  %v927_v45 = vadd.f32 1.0, %v1512_v61 }
 0x199   : > { %v1516_v1 = vpop.eup %1515  ;;  %1521 = vrcp.f32 %v940_v62  ;;  %v943_v49 = vadd.f32 1.0, %v1514_v31 }
 0x19a   : > { %v1518_v53 = vpop.eup %1517  ;;  %1523 = vrcp.f32 %v927_v45  ;;  %v925_v4 = vadd.f32 1.0, %v1516_v1 }
 0x19b   : > { %1525 = vrcp.f32 %v943_v49  ;;  %v941_v40 = vadd.f32 1.0, %v1518_v53 }
 0x19c   : > { %1527 = vrcp.f32 %v925_v4 }
 0x19d   : > { %1529 = vrcp.f32 %v941_v40 }
 0x1a2   : > { %v1520_v60 = vpop.eup %1519 }
 0x1a3   : > { %v1522_v10 = vpop.eup %1521  ;;  %v988_v6 = vmul.f32 %v1520_v60, %v2046_v35 }
 0x1a4   : > { %v1524_v11 = vpop.eup %1523  ;;  %v1004_v7 = vmul.f32 %v1522_v10, %v2050_v28 }
 0x1a5   : > { %v1526_v8 = vpop.eup %1525  ;;  %1020 = vst [vmem:[%s2010_s10 + $0x60] sm:$0xff] %v988_v6  ;;  %v991_v9 = vmul.f32 %v1524_v11, %v2054_v57 }
 0x1a6   : > { %v1528_v37 = vpop.eup %1527  ;;  %1036 = vst [vmem:[%s2010_s10 + $0xe0] sm:$0xff] %v1004_v7  ;;  %v1007_v16 = vmul.f32 %v1526_v8, %v2058_v3 }
 0x1a7   : > { %v1530_v12 = vpop.eup %1529  ;;  %1023 = vst [vmem:[%s2010_s10 + $0x78] sm:$0xff] %v991_v9  ;;  %v989_v35 = vmul.f32 %v1528_v37, %v2063_v2 }
 0x1a8   : > { %1039 = vst [vmem:[%s2010_s10 + $0xf8] sm:$0xff] %v1007_v16  ;;  %v1005_v28 = vmul.f32 %v1530_v12, %v2068_v32 }
 0x1a9   : > { %1021 = vst [vmem:[%s2010_s10 + $0x68] sm:$0xff] %v989_v35 }
 0x1aa   : > { %1037 = vst [vmem:[%s2010_s10 + $0xe8] sm:$0xff] %v1005_v28 }
 0x1ab   : > { %1602 = shalt.err (!%p1599_p5)
}
 0x1ac   : > { %s1603_s29 = scalar_lea.hbm %s2113_s15, 4096  ;;  %s1607_s20 = scalar_lea.hbm %s2171_s3, 8192 }
 0x1ad   : > { %p1604_p9 = scmp.ne.s32.totalorder %s2113_s15, %s1603_s29  ;;  %p1608_p3 = scmp.lt.u32.totalorder %s2113_s15, %s2171_s3 }
 0x1ae   : > { %p1609_p7 = scmp.lt.u32.totalorder %s1607_s20, %s1603_s29  ;;  %p1611_p4 = scmp.lt.u32.totalorder %s1603_s29, %s2113_s15 }
 0x1af   : > { %p1605_p1 = pnand %p1604_p9, %p1803_p10 }
 0x1b0   : > { %p1610_p13 = por %p1609_p7, %p1608_p3 }
 0x1b1   : > { %p1606_p2 = pneg %p1605_p1 }
 0x1b2   : > { %p1612_p6 = por %p1611_p4, %p1610_p13 }
 0x1b4   : > { %p1613_p8 = pnand %p1612_p6, %p1606_p2 }
 0x1b6   : > { %1616 = shalt.err (!%p1613_p8)
}
 0x1b7   : > { %s1682_s10 = smov 128   ;;  %s1683_s11 = smov 8  }
 0x1b8   : > { %1308 = dma.vmem_to_hbm [thread:$0]  (%p1803_p10), %s2115_s9, 4096, %s2113_s15, %s1041_s25, %s1682_s10, %s1682_s10, %s1683_s11  }
 0x1b9 PF: > { %s1070_s18 = sand.u32 1, %s1655_s12   ;;  %p2189_p12 = scmp.ne.s32.totalorder %s2179_s23, 0 }
 0x1ba   : > { %p2190_p11 = scmp.ge.s32.totalorder %s1675_s17, 2  ;;  %s1071_s19 = scalar_lea.sflag [#allocation5], %s1070_s18 }
 0x1bc   : > { %p1319_p0 = pnand %p2190_p11, %p2189_p12 }
 0x1be   : > { %1650 = dma.done.wait (!%p1319_p0), %s1071_s19, 4096  }
 0x1bf   : > { %1652 = vsyncadd (!%p1319_p0), %s1071_s19, 4294963200  ;;  %s20_s17 = sadd.s32 1, %s1675_s17   ;;  %s2191_s12 = smov %s1659_s13 }
 0x1c0   : > { %p17_p5 = scmp.ge.s32.totalorder %s20_s17, 4   ;;  %s2192_s13 = smov %s1663_s14 }
 0x1c1   : > { %s2193_s14 = smov %s1812_s5  ;;  %s2194_s15 = smov %s1671_s16 }
 0x1c2   : > { %s2195_s16 = smov %s2197_s28  ;;  %19 = sbr.rel (!%p17_p5) target bundleno = 7 (0x7), region = 93 }
 0x1c9   :  { %1076 = vsyncpa [#allocation4], 1 }
 0x1ca   :  { %1078 = vsyncpa [#allocation4 + $0x1], 1 }
 0x1cb   :  { %1079 = vsyncpa [#allocation7], 1 }
 0x1cc   :  { %1080 = vsyncpa [#allocation5], 1 }
 0x1cd   :  { %1082 = vsyncpa [#allocation5 + $0x1], 1 }

</bundles_post_ra>
